<compile_context>
chip_gen: v6e
topology: v6e:2x2x1
jax: 0.10.0
libtpu: 0.0.40
codegen_flags: <defaults>
</compile_context>

<pallas_src>
import functools

import jax
import jax.numpy as jnp
from jax.experimental import pallas as pl
from jax.experimental.pallas import tpu as pltpu


def _row_chunks(rows, max_chunks):
    """Static, contiguous, roughly-equal splits of the leading dim."""
    n = max(1, min(int(max_chunks), int(rows)))
    base, rem = divmod(int(rows), n)
    chunks, off = [], 0
    for i in range(n):
        sz = base + (1 if i < rem else 0)
        chunks.append((off, sz))
        off += sz
    return tuple(chunks)


def _periodically_kernel(period, chunks, counter_ref, src_hbm, tgt_hbm,
                         new_counter_ref, out_hbm, copy_sems):
    """counter_ref / new_counter_ref : (1,) int32 in SMEM.
    src_hbm / tgt_hbm / out_hbm      : full param arrays left in HBM (pl.ANY).
    out_hbm aliases tgt_hbm's buffer (input_output_aliases), so it already
    holds the current target params; it is only overwritten when body() runs.
    copy_sems                        : (len(chunks),) DMA semaphores."""
    del tgt_hbm  # aliased to out_hbm; never read inside the kernel

    c = counter_ref[0] + 1            # self._counter += 1
    new_counter_ref[0] = c
    # TODO(synk): int32 counter wraps after 2^31 calls (original uses a Python int).
    if period & (period - 1) == 0:    # power-of-two period: skip scalar divide
        do_body = (c & (period - 1)) == 0
    else:
        do_body = (c % period) == 0   # if self._counter % self._period == 0

    @pl.when(do_body)
    def _():
        # body(): hard target-network update.  Chunked HBM->HBM DMAs straight
        # into the aliased output; no VMEM staging, no vreg traffic.
        copies = []
        for i, (off, sz) in enumerate(chunks):
            cp = pltpu.make_async_copy(
                src_hbm.at[pl.ds(off, sz)],
                out_hbm.at[pl.ds(off, sz)],
                copy_sems.at[i])
            cp.start()
            copies.append(cp)
        for cp in copies:
            cp.wait()
    # No else-branch: on non-body steps the aliased output already contains
    # the (unchanged) target parameters — zero bytes moved.


@functools.partial(jax.jit,
                   static_argnames=("period", "max_dma_chunks"),
                   donate_argnums=(2,))   # donate tgt so aliasing is copy-free
def periodically_step(counter, src, tgt, *, period, max_dma_chunks=4):
    """One forward() call: returns (new_counter, new_target_params)."""
    assert src.shape == tgt.shape and src.dtype == tgt.dtype
    chunks = _row_chunks(src.shape[0], max_dma_chunks)
    kernel = functools.partial(_periodically_kernel, int(period), chunks)
    new_counter, new_tgt = pl.pallas_call(
        kernel,
        out_shape=(
            jax.ShapeDtypeStruct((1,), jnp.int32),
            jax.ShapeDtypeStruct(tgt.shape, tgt.dtype),
        ),
        in_specs=[
            pl.BlockSpec(memory_space=pltpu.MemorySpace.SMEM),   # counter
            pl.BlockSpec(memory_space=pl.ANY),                   # src (HBM)
            pl.BlockSpec(memory_space=pl.ANY),                   # tgt (HBM)
        ],
        out_specs=(
            pl.BlockSpec(memory_space=pltpu.MemorySpace.SMEM),   # new counter
            pl.BlockSpec(memory_space=pl.ANY),                   # new tgt (HBM)
        ),
        scratch_shapes=[pltpu.SemaphoreType.DMA((len(chunks),))],
        input_output_aliases={2: 1},    # tgt buffer IS the output buffer
    )(counter, src, tgt)
    return new_counter, new_tgt


class Periodically:
    """JAX/Pallas port of alf.utils.common.Periodically.

    The internal counter is carried as a (1,) int32 JAX array; the body
    (hard target-parameter copy) executes inside the Pallas kernel every
    `period` calls.  NOTE: the target-parameter argument is donated to the
    kernel (aliased to the output); do not reuse the old array after a call.
    """

    def __init__(self, period, name='periodically'):
        if period is None:
            # TODO(synk): period=None branch in the original forward() is
            # effectively dead code (counter % None raises); not modeled.
            raise ValueError("period must be an int for the Pallas port.")
        self._period = int(period)
        self._counter = jnp.zeros((1,), dtype=jnp.int32)
        self._name = name

    def __call__(self, src_params, tgt_params):
        self._counter, new_tgt = periodically_step(
            self._counter, src_params, tgt_params, period=self._period)
        return new_tgt

    @property
    def counter(self):
        return self._counter


if __name__ == "__main__":
    key = jax.random.PRNGKey(0)

    # Deterministic synthetic "network parameters" (lane-dense last dim).
    rows, cols = 32, 128
    src = jax.random.normal(key, (rows, cols), dtype=jnp.float32)
    tgt = jnp.zeros((rows, cols), dtype=jnp.float32)

    period = 3
    per = Periodically(period, name='periodic_target_update')

    ok = True
    for step in range(1, 2 * period + 1):
        tgt = per(src, tgt)          # old tgt buffer is donated; never reused
        jax.block_until_ready(tgt)
        # Before the first body execution the target stays at zeros; from the
        # first execution on it equals src (body is idempotent here).
        if step >= period:
            expected = src
        else:
            expected = jnp.zeros((rows, cols), dtype=jnp.float32)
        ok &= bool(jnp.allclose(tgt, expected))
        ok &= (int(per.counter[0]) == step)

    jax.block_until_ready(tgt)
    if ok:
        print("KERNEL_OK")
    else:
        print("MISMATCH")
</pallas_src>

<mosaic_0001>
module attributes {stable_mosaic.version = 11 : i64} {
  func.func @_periodically_kernel(%arg0: memref<1xi32, #tpu.memory_space<smem>>, %arg1: memref<32x128xf32, #tpu.memory_space<any>>, %arg2: memref<32x128xf32, #tpu.memory_space<any>>, %arg3: memref<1xi32, #tpu.memory_space<smem>>, %arg4: memref<32x128xf32, #tpu.memory_space<any>>, %arg5: memref<4x!tpu.dma_semaphore, #tpu.memory_space<semaphore_mem>>) attributes {dimension_semantics = [], scalar_prefetch = 0 : i64, scratch_operands = 1 : i64, tpu.core_type = #tpu.core_type<tc>} {
    %c0 = arith.constant 0 : index
    %0 = memref.load %arg0[%c0] : memref<1xi32, #tpu.memory_space<smem>>
    %c1_i32 = arith.constant 1 : i32
    %1 = arith.addi %0, %c1_i32 : i32
    %c0_0 = arith.constant 0 : index
    %2 = memref.load %arg3[%c0_0] : memref<1xi32, #tpu.memory_space<smem>>
    memref.store %1, %arg3[%c0_0] : memref<1xi32, #tpu.memory_space<smem>>
    %c3_i32 = arith.constant 3 : i32
    %c0_i32 = arith.constant 0 : i32
    %3 = arith.cmpi eq, %c3_i32, %c0_i32 : i32
    %c1_i32_1 = arith.constant 1 : i32
    %4 = arith.select %3, %c1_i32_1, %c3_i32 : i32
    %5 = arith.remsi %1, %4 : i32
    %c0_i32_2 = arith.constant 0 : i32
    %6 = arith.cmpi ne, %5, %c0_i32_2 : i32
    %c0_i32_3 = arith.constant 0 : i32
    %7 = arith.cmpi slt, %5, %c0_i32_3 : i32
    %c0_i32_4 = arith.constant 0 : i32
    %8 = arith.cmpi slt, %4, %c0_i32_4 : i32
    %9 = arith.xori %7, %8 : i1
    %10 = arith.andi %9, %6 : i1
    %11 = arith.addi %5, %4 : i32
    %12 = arith.select %10, %11, %5 : i32
    %c0_i32_5 = arith.constant 0 : i32
    %13 = arith.cmpi eq, %12, %c0_i32_5 : i32
    %14 = arith.extui %13 : i1 to i32
    %c0_i32_6 = arith.constant 0 : i32
    %15 = arith.cmpi ne, %14, %c0_i32_6 : i32
    scf.if %15 {
      %c0_i32_7 = arith.constant 0 : i32
      %c0_i32_8 = arith.constant 0 : i32
      %c0_i32_9 = arith.constant 0 : i32
      %16 = tpu.memref_slice %arg1[%c0_i32_8, %c0_i32_9] : memref<32x128xf32, #tpu.memory_space<any>> -> memref<8x128xf32, #tpu.memory_space<any>>
      %c0_i32_10 = arith.constant 0 : i32
      %c0_i32_11 = arith.constant 0 : i32
      %17 = tpu.memref_slice %arg4[%c0_i32_10, %c0_i32_11] : memref<32x128xf32, #tpu.memory_space<any>> -> memref<8x128xf32, #tpu.memory_space<any>>
      %18 = tpu.memref_slice %arg5[%c0_i32_7] : memref<4x!tpu.dma_semaphore, #tpu.memory_space<semaphore_mem>> -> memref<1x!tpu.dma_semaphore, #tpu.memory_space<semaphore_mem>>
      %19 = tpu.memref_squeeze %18 : memref<1x!tpu.dma_semaphore, #tpu.memory_space<semaphore_mem>> -> memref<!tpu.dma_semaphore, #tpu.memory_space<semaphore_mem>>
      tpu.enqueue_dma source(%16 : memref<8x128xf32, #tpu.memory_space<any>>) target(%17 : memref<8x128xf32, #tpu.memory_space<any>>) target_semaphore(%19 : memref<!tpu.dma_semaphore, #tpu.memory_space<semaphore_mem>>)
      %c1_i32_12 = arith.constant 1 : i32
      %c8_i32 = arith.constant 8 : i32
      %c0_i32_13 = arith.constant 0 : i32
      %20 = tpu.memref_slice %arg1[%c8_i32, %c0_i32_13] : memref<32x128xf32, #tpu.memory_space<any>> -> memref<8x128xf32, #tpu.memory_space<any>>
      %c8_i32_14 = arith.constant 8 : i32
      %c0_i32_15 = arith.constant 0 : i32
      %21 = tpu.memref_slice %arg4[%c8_i32_14, %c0_i32_15] : memref<32x128xf32, #tpu.memory_space<any>> -> memref<8x128xf32, #tpu.memory_space<any>>
      %22 = tpu.memref_slice %arg5[%c1_i32_12] : memref<4x!tpu.dma_semaphore, #tpu.memory_space<semaphore_mem>> -> memref<1x!tpu.dma_semaphore, #tpu.memory_space<semaphore_mem>>
      %23 = tpu.memref_squeeze %22 : memref<1x!tpu.dma_semaphore, #tpu.memory_space<semaphore_mem>> -> memref<!tpu.dma_semaphore, #tpu.memory_space<semaphore_mem>>
      tpu.enqueue_dma source(%20 : memref<8x128xf32, #tpu.memory_space<any>>) target(%21 : memref<8x128xf32, #tpu.memory_space<any>>) target_semaphore(%23 : memref<!tpu.dma_semaphore, #tpu.memory_space<semaphore_mem>>)
      %c2_i32 = arith.constant 2 : i32
      %c16_i32 = arith.constant 16 : i32
      %c0_i32_16 = arith.constant 0 : i32
      %24 = tpu.memref_slice %arg1[%c16_i32, %c0_i32_16] : memref<32x128xf32, #tpu.memory_space<any>> -> memref<8x128xf32, #tpu.memory_space<any>>
      %c16_i32_17 = arith.constant 16 : i32
      %c0_i32_18 = arith.constant 0 : i32
      %25 = tpu.memref_slice %arg4[%c16_i32_17, %c0_i32_18] : memref<32x128xf32, #tpu.memory_space<any>> -> memref<8x128xf32, #tpu.memory_space<any>>
      %26 = tpu.memref_slice %arg5[%c2_i32] : memref<4x!tpu.dma_semaphore, #tpu.memory_space<semaphore_mem>> -> memref<1x!tpu.dma_semaphore, #tpu.memory_space<semaphore_mem>>
      %27 = tpu.memref_squeeze %26 : memref<1x!tpu.dma_semaphore, #tpu.memory_space<semaphore_mem>> -> memref<!tpu.dma_semaphore, #tpu.memory_space<semaphore_mem>>
      tpu.enqueue_dma source(%24 : memref<8x128xf32, #tpu.memory_space<any>>) target(%25 : memref<8x128xf32, #tpu.memory_space<any>>) target_semaphore(%27 : memref<!tpu.dma_semaphore, #tpu.memory_space<semaphore_mem>>)
      %c3_i32_19 = arith.constant 3 : i32
      %c24_i32 = arith.constant 24 : i32
      %c0_i32_20 = arith.constant 0 : i32
      %28 = tpu.memref_slice %arg1[%c24_i32, %c0_i32_20] : memref<32x128xf32, #tpu.memory_space<any>> -> memref<8x128xf32, #tpu.memory_space<any>>
      %c24_i32_21 = arith.constant 24 : i32
      %c0_i32_22 = arith.constant 0 : i32
      %29 = tpu.memref_slice %arg4[%c24_i32_21, %c0_i32_22] : memref<32x128xf32, #tpu.memory_space<any>> -> memref<8x128xf32, #tpu.memory_space<any>>
      %30 = tpu.memref_slice %arg5[%c3_i32_19] : memref<4x!tpu.dma_semaphore, #tpu.memory_space<semaphore_mem>> -> memref<1x!tpu.dma_semaphore, #tpu.memory_space<semaphore_mem>>
      %31 = tpu.memref_squeeze %30 : memref<1x!tpu.dma_semaphore, #tpu.memory_space<semaphore_mem>> -> memref<!tpu.dma_semaphore, #tpu.memory_space<semaphore_mem>>
      tpu.enqueue_dma source(%28 : memref<8x128xf32, #tpu.memory_space<any>>) target(%29 : memref<8x128xf32, #tpu.memory_space<any>>) target_semaphore(%31 : memref<!tpu.dma_semaphore, #tpu.memory_space<semaphore_mem>>)
      %c0_i32_23 = arith.constant 0 : i32
      %c0_i32_24 = arith.constant 0 : i32
      %c0_i32_25 = arith.constant 0 : i32
      %32 = tpu.memref_slice %arg1[%c0_i32_24, %c0_i32_25] : memref<32x128xf32, #tpu.memory_space<any>> -> memref<8x128xf32, #tpu.memory_space<any>>
      %c0_i32_26 = arith.constant 0 : i32
      %c0_i32_27 = arith.constant 0 : i32
      %33 = tpu.memref_slice %arg4[%c0_i32_26, %c0_i32_27] : memref<32x128xf32, #tpu.memory_space<any>> -> memref<8x128xf32, #tpu.memory_space<any>>
      %34 = tpu.memref_slice %arg5[%c0_i32_23] : memref<4x!tpu.dma_semaphore, #tpu.memory_space<semaphore_mem>> -> memref<1x!tpu.dma_semaphore, #tpu.memory_space<semaphore_mem>>
      %35 = tpu.memref_squeeze %34 : memref<1x!tpu.dma_semaphore, #tpu.memory_space<semaphore_mem>> -> memref<!tpu.dma_semaphore, #tpu.memory_space<semaphore_mem>>
      tpu.wait_dma2 semaphore(%35 : memref<!tpu.dma_semaphore, #tpu.memory_space<semaphore_mem>>) src(%32 : memref<8x128xf32, #tpu.memory_space<any>>) dst(%33 : memref<8x128xf32, #tpu.memory_space<any>>)
      %c1_i32_28 = arith.constant 1 : i32
      %c8_i32_29 = arith.constant 8 : i32
      %c0_i32_30 = arith.constant 0 : i32
      %36 = tpu.memref_slice %arg1[%c8_i32_29, %c0_i32_30] : memref<32x128xf32, #tpu.memory_space<any>> -> memref<8x128xf32, #tpu.memory_space<any>>
      %c8_i32_31 = arith.constant 8 : i32
      %c0_i32_32 = arith.constant 0 : i32
      %37 = tpu.memref_slice %arg4[%c8_i32_31, %c0_i32_32] : memref<32x128xf32, #tpu.memory_space<any>> -> memref<8x128xf32, #tpu.memory_space<any>>
      %38 = tpu.memref_slice %arg5[%c1_i32_28] : memref<4x!tpu.dma_semaphore, #tpu.memory_space<semaphore_mem>> -> memref<1x!tpu.dma_semaphore, #tpu.memory_space<semaphore_mem>>
      %39 = tpu.memref_squeeze %38 : memref<1x!tpu.dma_semaphore, #tpu.memory_space<semaphore_mem>> -> memref<!tpu.dma_semaphore, #tpu.memory_space<semaphore_mem>>
      tpu.wait_dma2 semaphore(%39 : memref<!tpu.dma_semaphore, #tpu.memory_space<semaphore_mem>>) src(%36 : memref<8x128xf32, #tpu.memory_space<any>>) dst(%37 : memref<8x128xf32, #tpu.memory_space<any>>)
      %c2_i32_33 = arith.constant 2 : i32
      %c16_i32_34 = arith.constant 16 : i32
      %c0_i32_35 = arith.constant 0 : i32
      %40 = tpu.memref_slice %arg1[%c16_i32_34, %c0_i32_35] : memref<32x128xf32, #tpu.memory_space<any>> -> memref<8x128xf32, #tpu.memory_space<any>>
      %c16_i32_36 = arith.constant 16 : i32
      %c0_i32_37 = arith.constant 0 : i32
      %41 = tpu.memref_slice %arg4[%c16_i32_36, %c0_i32_37] : memref<32x128xf32, #tpu.memory_space<any>> -> memref<8x128xf32, #tpu.memory_space<any>>
      %42 = tpu.memref_slice %arg5[%c2_i32_33] : memref<4x!tpu.dma_semaphore, #tpu.memory_space<semaphore_mem>> -> memref<1x!tpu.dma_semaphore, #tpu.memory_space<semaphore_mem>>
      %43 = tpu.memref_squeeze %42 : memref<1x!tpu.dma_semaphore, #tpu.memory_space<semaphore_mem>> -> memref<!tpu.dma_semaphore, #tpu.memory_space<semaphore_mem>>
      tpu.wait_dma2 semaphore(%43 : memref<!tpu.dma_semaphore, #tpu.memory_space<semaphore_mem>>) src(%40 : memref<8x128xf32, #tpu.memory_space<any>>) dst(%41 : memref<8x128xf32, #tpu.memory_space<any>>)
      %c3_i32_38 = arith.constant 3 : i32
      %c24_i32_39 = arith.constant 24 : i32
      %c0_i32_40 = arith.constant 0 : i32
      %44 = tpu.memref_slice %arg1[%c24_i32_39, %c0_i32_40] : memref<32x128xf32, #tpu.memory_space<any>> -> memref<8x128xf32, #tpu.memory_space<any>>
      %c24_i32_41 = arith.constant 24 : i32
      %c0_i32_42 = arith.constant 0 : i32
      %45 = tpu.memref_slice %arg4[%c24_i32_41, %c0_i32_42] : memref<32x128xf32, #tpu.memory_space<any>> -> memref<8x128xf32, #tpu.memory_space<any>>
      %46 = tpu.memref_slice %arg5[%c3_i32_38] : memref<4x!tpu.dma_semaphore, #tpu.memory_space<semaphore_mem>> -> memref<1x!tpu.dma_semaphore, #tpu.memory_space<semaphore_mem>>
      %47 = tpu.memref_squeeze %46 : memref<1x!tpu.dma_semaphore, #tpu.memory_space<semaphore_mem>> -> memref<!tpu.dma_semaphore, #tpu.memory_space<semaphore_mem>>
      tpu.wait_dma2 semaphore(%47 : memref<!tpu.dma_semaphore, #tpu.memory_space<semaphore_mem>>) src(%44 : memref<8x128xf32, #tpu.memory_space<any>>) dst(%45 : memref<8x128xf32, #tpu.memory_space<any>>)
    } else {
    }
    return
  }
}

</mosaic_0001>

<bundles_post_ra>
// kernel: periodically_step.1
= control target key start
LH: loop header
LB: loop body
LE: loop exit
PB: predicated region body
PF: predicated region fallthrough
CT: control target
= control target key end

     0   :  { %11 = vsyncpa [#allocation5], 0  ;;  %s175_s13 = smov [#allocation2]   ;;  %s176_s14 = smov 131072   ;;  %s249_s0 = inlined_call_operand.<no memory space> [shape: s32[1], index: 0, kind: input, shape index: {}]   ;;  %s250_s1 = inlined_call_operand.hbm [shape: f32[32,128], index: 1, kind: input, shape index: {}]   ;;  %s251_s2 = inlined_call_operand.hbm [shape: f32[32,128], index: 2, kind: input, shape index: {}, may-alias: {2,4}]   ;;  %s252_s3 = inlined_call_operand.hbm [shape: s32[1], index: 3, kind: output, shape index: {0}]   ;;  %s253_s4 = inlined_call_operand.hbm [shape: f32[32,128], index: 4, kind: output, shape index: {1}, may-alias: {2,4}]  }
   0x1   :  { %s15_s17 = sadd.s32 1, %s249_s0  ;;  %s42_s23 = scalar_lea.hbm %s250_s1, 128 }
   0x2   :  { %17 = sst [smem:[#allocation4]] %s15_s17  ;;  %s19_s18 = ssub.s32 0, %s15_s17 }
   0x3   :  { %s121_s19 = smin.u32 %s19_s18, %s15_s17  ;;  %p18_p0 = scmp.lt.s32.totalorder %s15_s17, 0 }
   0x4   :  { %147 = sdivrem.u32 %s121_s19, 3  ;;  %s43_s26 = scalar_lea.hbm %s253_s4, 128 }
   0x5   :  { %s52_s29 = scalar_lea.hbm %s250_s1, 256  ;;  %s53_s6 = scalar_lea.hbm %s253_s4, 256 }
   0x6   :  { %s62_s9 = scalar_lea.hbm %s250_s1, 384  ;;  %s63_s12 = scalar_lea.hbm %s253_s4, 384 }
   0x7   :  { %s177_s15 = smov 0   ;;  %s180_s22 = smov [#allocation2 + $0x3]  }
   0xd   :  { %s148_s20 = spop.drf %147 }
   0xe   :  { %s23_s21 = ssub.s32 0, %s148_s20 }
   0xf   :  { %s255_s21 = smov (!%p18_p0, %s23_s21), %s148_s20  ;;  %s178_s20 = smov [#allocation2 + $0x1]  }
  0x10   :  { %p123_p1 = scmp.lt.s32.totalorder %s255_s21, 0  ;;  %s29_s27 = sadd.s32 3, %s255_s21 }
  0x12   :  { %s257_s27 = smov (!%p123_p1, %s29_s27), %s255_s21  ;;  %s179_s21 = smov [#allocation2 + $0x2]  }
  0x13   :  { %p138_p2 = scmp.eq.s32.totalorder %s257_s27, 0 }
  0x15   :  { %130 = dma.general (%p138_p2), %s250_s1, 128, %s253_s4, %s175_s13, %s176_s14, [#allocation7], %s177_s15, 0  }
  0x16   :  { %131 = dma.general (%p138_p2), %s42_s23, 128, %s43_s26, %s178_s20, %s176_s14, [#allocation9], %s177_s15, 0  }
  0x17   :  { %132 = dma.general (%p138_p2), %s52_s29, 128, %s53_s6, %s179_s21, %s176_s14, [#allocation11], %s177_s15, 0  }
  0x18   :  { %133 = dma.general (%p138_p2), %s62_s9, 128, %s63_s12, %s180_s22, %s176_s14, [#allocation13], %s177_s15, 0  }
  0x19   :  { %158 = dma.done.wait (%p138_p2), [#allocation2], 128 }
  0x1a   :  { %160 = vsyncadd (%p138_p2), [#allocation2], 4294967168 }
  0x1b   :  { %162 = dma.done.wait (%p138_p2), [#allocation2 + $0x1], 128 }
  0x1c   :  { %164 = vsyncadd (%p138_p2), [#allocation2 + $0x1], 4294967168 }
  0x1d   :  { %166 = dma.done.wait (%p138_p2), [#allocation2 + $0x2], 128 }
  0x1e   :  { %168 = vsyncadd (%p138_p2), [#allocation2 + $0x2], 4294967168 }
  0x1f   :  { %170 = dma.done.wait (%p138_p2), [#allocation2 + $0x3], 128 }
  0x20   :  { %172 = vsyncadd (%p138_p2), [#allocation2 + $0x3], 4294967168  ;;  %s181_s1 = smov [#allocation4]  }
  0x21   :  { %88 = dma.smem_to_hbm %s181_s1, 16, %s252_s3, [#allocation5]  }
  0x22   :  { %173 = dma.done.wait [#allocation5], 16  }
  0x23   :  { %174 = vsyncadd [#allocation5], 4294967280 }
  0x24   :  { %92 = sfence }
  0x25   :  { %93 = vsyncpa [#allocation5], 1 }
  0x26   :  { %94 = vsyncmov [#allocation2] }
  0x29   :  { %s95_s23 = vpop.sfrf %94 }
  0x2a   :  { %p125_p3 = scmp.ne.s32.totalorder %s95_s23, 0 }
  0x2c   :  { %99 = shalt.err (%p125_p3)  }
  0x2d   :  { %101 = vsyncmov [#allocation2 + $0x1] }
  0x30   :  { %s102_s24 = vpop.sfrf %101 }
  0x31   :  { %p126_p4 = scmp.ne.s32.totalorder %s102_s24, 0 }
  0x33   :  { %106 = shalt.err (%p126_p4)  }
  0x34   :  { %108 = vsyncmov [#allocation2 + $0x2] }
  0x37   :  { %s109_s25 = vpop.sfrf %108 }
  0x38   :  { %p127_p5 = scmp.ne.s32.totalorder %s109_s25, 0 }
  0x3a   :  { %113 = shalt.err (%p127_p5)  }
  0x3b   :  { %115 = vsyncmov [#allocation2 + $0x3] }
  0x3e   :  { %s116_s26 = vpop.sfrf %115 }
  0x3f   :  { %p128_p6 = scmp.ne.s32.totalorder %s116_s26, 0 }
  0x41   :  { %120 = shalt.err (%p128_p6)  }

</bundles_post_ra>
